<compile_context>
chip_gen: v7x
topology: tpu7x:2x2x1
jax: 0.10.0
libtpu: 0.0.40
codegen_flags: <defaults>
</compile_context>

<pallas_src>
import jax
import jax.numpy as jnp
from jax.experimental import pallas as pl
from jax.experimental.pallas import tpu as pltpu

EPS = 1e-6  # IoULoss epsilon


# ----------------------------------------------------------------------------
# Generation-aware budgets (static, picked at trace time).
# ----------------------------------------------------------------------------
def _budgets():
    """Returns (per-input tile budget bytes, vmem_limit_bytes)."""
    try:
        vmem_cap = pltpu.get_tpu_info().vmem_capacity_bytes
    except Exception:
        vmem_cap = 0
    if vmem_cap >= 100 * 1024 * 1024:            # v5e / v6e: 128 MiB VMEM
        return 4 * 1024 * 1024, 48 * 1024 * 1024
    # v7x (64 MiB per TensorCore) or unknown: stay conservative.
    # Resident ~= 4 inputs x 2 buffers x budget (+ tiny outputs) <= 16 MiB.
    return 2 * 1024 * 1024, 32 * 1024 * 1024


# ----------------------------------------------------------------------------
# Static tile selection (all shapes are static at trace time).
# ----------------------------------------------------------------------------
def _divisors(n, step):
    return [d for d in range(step, n + 1, step) if n % d == 0]


def _pick_tiles(rows, hw, itemsize, budget):
    """Pick (row_tile, hw_chunk) obeying the (8, 128) block rule and the budget."""
    row_cands = sorted(set(_divisors(rows, 8)) | {rows})     # sublane dim: x8 or full
    hw_cands = sorted(set(_divisors(hw, 128)) | {hw})        # lane dim: x128 or full

    def fits(rt, hwc):
        return rt * hwc * itemsize <= budget

    rt_min = row_cands[0]
    hw_fit = [h for h in hw_cands if fits(rt_min, h)]
    hwc = hw_fit[-1] if hw_fit else hw_cands[0]

    rt_fit = [r for r in row_cands if fits(r, hwc)] or [rt_min]
    # Prefer >= 2 steps on the parallel row axis (v7x megacore sharding);
    # extra grid steps cost ~0.35 us each, negligible on v5e/v6e.
    rt_par = [r for r in rt_fit if rows // r >= 2]
    rt = rt_par[-1] if rt_par else rt_fit[-1]
    return rt, hwc


# ----------------------------------------------------------------------------
# Pallas kernel: per-row spatial sums for BOTH hands in one pass.
# grid = (rows // rt, HW // hwc); the spatial axis is a reduction axis and the
# (rt, 1) output blocks are resident across it (accumulate directly, zero at
# step 0 -> no scratch accumulators, no final copy).
# ----------------------------------------------------------------------------
def _iou_sums_kernel(lp_ref, ll_ref, rp_ref, rl_ref,
                     inter_l_ref, psq_l_ref, tsq_l_ref,
                     inter_r_ref, psq_r_ref, tsq_r_ref):
    c = pl.program_id(1)  # spatial-chunk (reduction) axis

    @pl.when(c == 0)
    def _():
        for ref in (inter_l_ref, psq_l_ref, tsq_l_ref,
                    inter_r_ref, psq_r_ref, tsq_r_ref):
            ref[...] = jnp.zeros_like(ref)

    lp = lp_ref[...].astype(jnp.float32)   # (rt, hwc); bf16 upcast per-vreg
    ll = ll_ref[...].astype(jnp.float32)
    rp = rp_ref[...].astype(jnp.float32)
    rl = rl_ref[...].astype(jnp.float32)

    inter_l_ref[...] += jnp.sum(ll * lp, axis=-1, keepdims=True)
    psq_l_ref[...] += jnp.sum(lp * lp, axis=-1, keepdims=True)
    tsq_l_ref[...] += jnp.sum(ll * ll, axis=-1, keepdims=True)
    inter_r_ref[...] += jnp.sum(rl * rp, axis=-1, keepdims=True)
    psq_r_ref[...] += jnp.sum(rp * rp, axis=-1, keepdims=True)
    tsq_r_ref[...] += jnp.sum(rl * rl, axis=-1, keepdims=True)


def _iou_sums_pair(left_pred, left_labels, right_pred, right_labels):
    """Fused per-(batch, keypoint) spatial sums for both hands.

    Inputs: (B, K, H, W), f32 or bf16.
    Returns six f32 (B, K) arrays: inter_l, psq_l, tsq_l, inter_r, psq_r, tsq_r.
    """
    B, K, H, W = left_pred.shape
    rows, hw = B * K, H * W
    itemsize = max(jnp.dtype(x.dtype).itemsize
                   for x in (left_pred, left_labels, right_pred, right_labels))
    budget, vmem_limit = _budgets()

    # Free reshape to a dense 2D slab (no HBM copy).
    arrs = [x.reshape(rows, hw)
            for x in (left_pred, left_labels, right_pred, right_labels)]

    rows_p, hw_p = rows, hw
    rt, hwc = _pick_tiles(rows_p, hw_p, itemsize, budget)

    # Fallbacks for awkward shapes: zero-pad (zeros change none of the sums)
    # only when the chosen tile would exceed the budget.
    if rt * hwc * itemsize > budget and hw % 128 != 0:
        hw_p = ((hw + 127) // 128) * 128
        arrs = [jnp.pad(a, ((0, 0), (0, hw_p - hw))) for a in arrs]
        rt, hwc = _pick_tiles(rows_p, hw_p, itemsize, budget)
    if rt * hwc * itemsize > budget and rows % 8 != 0:
        rows_p = ((rows + 7) // 8) * 8
        arrs = [jnp.pad(a, ((0, rows_p - rows), (0, 0))) for a in arrs]
        rt, hwc = _pick_tiles(rows_p, hw_p, itemsize, budget)

    grid = (rows_p // rt, hw_p // hwc)
    in_spec = pl.BlockSpec((rt, hwc), lambda r, c: (r, c))
    out_spec = pl.BlockSpec((rt, 1), lambda r, c: (r, 0))
    out = jax.ShapeDtypeStruct((rows_p, 1), jnp.float32)

    sums = pl.pallas_call(
        _iou_sums_kernel,
        out_shape=(out,) * 6,
        grid_spec=pltpu.PrefetchScalarGridSpec(
            num_scalar_prefetch=0,
            grid=grid,
            in_specs=[in_spec] * 4,
            out_specs=(out_spec,) * 6,
        ),
        compiler_params=pltpu.CompilerParams(
            dimension_semantics=("parallel", "arbitrary"),
            vmem_limit_bytes=vmem_limit,
        ),
    )(*arrs)

    return tuple(s[:rows, 0].reshape(B, K) for s in sums)


# ----------------------------------------------------------------------------
# Plain-JAX glue (tiny tensors: separate kernel launches would be overhead).
# ----------------------------------------------------------------------------
def _cross_entropy_mean(logits, labels):
    """nn.CrossEntropyLoss (mean) on (B, C) logits / (B,) class indices."""
    logits = logits.astype(jnp.float32)
    lse = jax.scipy.special.logsumexp(logits, axis=-1)
    picked = jnp.take_along_axis(logits, labels[:, None].astype(jnp.int32), axis=-1)[:, 0]
    return jnp.mean(lse - picked)


def _masked_iou_loss(inter, psq, tsq, batch_mask):
    """IoULoss over rows where batch_mask != 0 (== PyTorch row-drop + mean)."""
    union = tsq + psq - inter
    iou = (inter + EPS) / (union + EPS)                     # (B, K)
    keep = (batch_mask != 0).astype(jnp.float32)            # (B,)
    count = jnp.sum(keep)
    k = iou.shape[1]
    # TODO(synk): if batch_mask selects zero rows, torch.mean over an empty
    # tensor is NaN; this masked mean reproduces that 0/0 rather than guarding it.
    return 1.0 - jnp.sum(iou * keep[:, None]) / (count * k)


# ----------------------------------------------------------------------------
# EffHandEgoNetLoss.forward
# ----------------------------------------------------------------------------
@jax.jit
def eff_hand_ego_net_loss(pred_left_flag, pred_right_flag,
                          labels_left_flag, labels_right_flag,
                          left_pred, right_pred, left_labels, right_labels,
                          batch_left, batch_right):
    loss_flags = (_cross_entropy_mean(pred_left_flag, labels_left_flag)
                  + _cross_entropy_mean(pred_right_flag, labels_right_flag)) / 2.0

    (inter_l, psq_l, tsq_l,
     inter_r, psq_r, tsq_r) = _iou_sums_pair(left_pred, left_labels,
                                             right_pred, right_labels)
    loss_left = _masked_iou_loss(inter_l, psq_l, tsq_l, batch_left)
    loss_right = _masked_iou_loss(inter_r, psq_r, tsq_r, batch_right)
    loss_hands = (loss_left + loss_right) / 2.0

    return 0.02 * loss_flags + 0.98 * loss_hands


# ----------------------------------------------------------------------------
# Pure-JAX reference (mirrors the PyTorch module) for a sanity check.
# ----------------------------------------------------------------------------
def _reference_loss(pred_left_flag, pred_right_flag,
                    labels_left_flag, labels_right_flag,
                    left_pred, right_pred, left_labels, right_labels,
                    batch_left, batch_right):
    def ce(logits, labels):
        lse = jax.scipy.special.logsumexp(logits, axis=-1)
        picked = jnp.take_along_axis(logits, labels[:, None], axis=-1)[:, 0]
        return jnp.mean(lse - picked)

    def iou_loss(pred, true):
        inter = (true * pred).sum(-1).sum(-1)
        union = (true ** 2).sum(-1).sum(-1) + (pred ** 2).sum(-1).sum(-1) - inter
        return 1.0 - jnp.mean((inter + EPS) / (union + EPS))

    loss_flags = (ce(pred_left_flag, labels_left_flag)
                  + ce(pred_right_flag, labels_right_flag)) / 2.0
    lp, ll = left_pred[batch_left != 0], left_labels[batch_left != 0]
    rp, rl = right_pred[batch_right != 0], right_labels[batch_right != 0]
    loss_hands = (iou_loss(lp, ll) + iou_loss(rp, rl)) / 2.0
    return 0.02 * loss_flags + 0.98 * loss_hands


if __name__ == "__main__":
    key = jax.random.PRNGKey(0)
    B, C, K, H, W = 4, 2, 8, 16, 16
    ks = jax.random.split(key, 8)

    pred_left_flag = jax.random.normal(ks[0], (B, C), jnp.float32)
    pred_right_flag = jax.random.normal(ks[1], (B, C), jnp.float32)
    labels_left_flag = jax.random.randint(ks[2], (B,), 0, C, jnp.int32)
    labels_right_flag = jax.random.randint(ks[3], (B,), 0, C, jnp.int32)

    left_pred = jax.nn.sigmoid(jax.random.normal(ks[4], (B, K, H, W), jnp.float32))
    right_pred = jax.nn.sigmoid(jax.random.normal(ks[5], (B, K, H, W), jnp.float32))
    left_labels = jax.random.uniform(ks[6], (B, K, H, W), jnp.float32)
    right_labels = jax.random.uniform(ks[7], (B, K, H, W), jnp.float32)

    batch_left = jnp.array([1, 0, 1, 1], jnp.int32)
    batch_right = jnp.array([1, 1, 0, 1], jnp.int32)

    args = (pred_left_flag, pred_right_flag, labels_left_flag, labels_right_flag,
            left_pred, right_pred, left_labels, right_labels, batch_left, batch_right)

    loss = eff_hand_ego_net_loss(*args)
    jax.block_until_ready(loss)

    ref = _reference_loss(*args)
    assert jnp.allclose(loss, ref, rtol=1e-5, atol=1e-5), (loss, ref)

    # bf16 heatmaps: kernel upcasts per-vreg, f32 accumulation -> loose-tolerance
    # match against the f32 reference.
    bf16_loss = eff_hand_ego_net_loss(
        pred_left_flag, pred_right_flag, labels_left_flag, labels_right_flag,
        left_pred.astype(jnp.bfloat16), right_pred.astype(jnp.bfloat16),
        left_labels.astype(jnp.bfloat16), right_labels.astype(jnp.bfloat16),
        batch_left, batch_right)
    jax.block_until_ready(bf16_loss)
    assert jnp.allclose(bf16_loss, ref, rtol=2e-2, atol=2e-2), (bf16_loss, ref)

    print("KERNEL_OK")
</pallas_src>

<mosaic_0001>
module attributes {stable_mosaic.version = 11 : i64} {
  func.func @_iou_sums_kernel(%arg0: i32, %arg1: i32, %arg2: memref<16x256xf32, #tpu.memory_space<vmem>>, %arg3: memref<16x256xf32, #tpu.memory_space<vmem>>, %arg4: memref<16x256xf32, #tpu.memory_space<vmem>>, %arg5: memref<16x256xf32, #tpu.memory_space<vmem>>, %arg6: memref<16x1xf32, #tpu.memory_space<vmem>>, %arg7: memref<16x1xf32, #tpu.memory_space<vmem>>, %arg8: memref<16x1xf32, #tpu.memory_space<vmem>>, %arg9: memref<16x1xf32, #tpu.memory_space<vmem>>, %arg10: memref<16x1xf32, #tpu.memory_space<vmem>>, %arg11: memref<16x1xf32, #tpu.memory_space<vmem>>) attributes {dimension_semantics = [#tpu.dimension_semantics<parallel>, #tpu.dimension_semantics<arbitrary>], iteration_bounds = array<i64: 2, 1>, scalar_prefetch = 0 : i64, scratch_operands = 0 : i64, tpu.core_type = #tpu.core_type<tc>, window_params = [{transform_indices = @transform_0, window_bounds = array<i64: 16, 256>}, {transform_indices = @transform_1, window_bounds = array<i64: 16, 256>}, {transform_indices = @transform_2, window_bounds = array<i64: 16, 256>}, {transform_indices = @transform_3, window_bounds = array<i64: 16, 256>}, {transform_indices = @transform_4, window_bounds = array<i64: 16, 1>}, {transform_indices = @transform_5, window_bounds = array<i64: 16, 1>}, {transform_indices = @transform_6, window_bounds = array<i64: 16, 1>}, {transform_indices = @transform_7, window_bounds = array<i64: 16, 1>}, {transform_indices = @transform_8, window_bounds = array<i64: 16, 1>}, {transform_indices = @transform_9, window_bounds = array<i64: 16, 1>}]} {
    %c0_i32 = arith.constant 0 : i32
    %0 = arith.cmpi eq, %arg1, %c0_i32 : i32
    %1 = arith.extui %0 : i1 to i32
    %c0_i32_0 = arith.constant 0 : i32
    %2 = arith.cmpi ne, %1, %c0_i32_0 : i32
    scf.if %2 {
      %cst_37 = arith.constant 0.000000e+00 : f32
      %43 = vector.broadcast %cst_37 : f32 to vector<16x1xf32>
      %c0_38 = arith.constant 0 : index
      %c0_39 = arith.constant 0 : index
      %44 = vector.load %arg6[%c0_38, %c0_39] : memref<16x1xf32, #tpu.memory_space<vmem>>, vector<16x1xf32>
      tpu.vector_store %arg6[%c0_38, %c0_39], %43 {strides = array<i32>} : memref<16x1xf32, #tpu.memory_space<vmem>>, vector<16x1xf32>,
      %cst_40 = arith.constant 0.000000e+00 : f32
      %45 = vector.broadcast %cst_40 : f32 to vector<16x1xf32>
      %c0_41 = arith.constant 0 : index
      %c0_42 = arith.constant 0 : index
      %46 = vector.load %arg7[%c0_41, %c0_42] : memref<16x1xf32, #tpu.memory_space<vmem>>, vector<16x1xf32>
      tpu.vector_store %arg7[%c0_41, %c0_42], %45 {strides = array<i32>} : memref<16x1xf32, #tpu.memory_space<vmem>>, vector<16x1xf32>,
      %cst_43 = arith.constant 0.000000e+00 : f32
      %47 = vector.broadcast %cst_43 : f32 to vector<16x1xf32>
      %c0_44 = arith.constant 0 : index
      %c0_45 = arith.constant 0 : index
      %48 = vector.load %arg8[%c0_44, %c0_45] : memref<16x1xf32, #tpu.memory_space<vmem>>, vector<16x1xf32>
      tpu.vector_store %arg8[%c0_44, %c0_45], %47 {strides = array<i32>} : memref<16x1xf32, #tpu.memory_space<vmem>>, vector<16x1xf32>,
      %cst_46 = arith.constant 0.000000e+00 : f32
      %49 = vector.broadcast %cst_46 : f32 to vector<16x1xf32>
      %c0_47 = arith.constant 0 : index
      %c0_48 = arith.constant 0 : index
      %50 = vector.load %arg9[%c0_47, %c0_48] : memref<16x1xf32, #tpu.memory_space<vmem>>, vector<16x1xf32>
      tpu.vector_store %arg9[%c0_47, %c0_48], %49 {strides = array<i32>} : memref<16x1xf32, #tpu.memory_space<vmem>>, vector<16x1xf32>,
      %cst_49 = arith.constant 0.000000e+00 : f32
      %51 = vector.broadcast %cst_49 : f32 to vector<16x1xf32>
      %c0_50 = arith.constant 0 : index
      %c0_51 = arith.constant 0 : index
      %52 = vector.load %arg10[%c0_50, %c0_51] : memref<16x1xf32, #tpu.memory_space<vmem>>, vector<16x1xf32>
      tpu.vector_store %arg10[%c0_50, %c0_51], %51 {strides = array<i32>} : memref<16x1xf32, #tpu.memory_space<vmem>>, vector<16x1xf32>,
      %cst_52 = arith.constant 0.000000e+00 : f32
      %53 = vector.broadcast %cst_52 : f32 to vector<16x1xf32>
      %c0_53 = arith.constant 0 : index
      %c0_54 = arith.constant 0 : index
      %54 = vector.load %arg11[%c0_53, %c0_54] : memref<16x1xf32, #tpu.memory_space<vmem>>, vector<16x1xf32>
      tpu.vector_store %arg11[%c0_53, %c0_54], %53 {strides = array<i32>} : memref<16x1xf32, #tpu.memory_space<vmem>>, vector<16x1xf32>,
    } else {
    }
    %c0 = arith.constant 0 : index
    %c0_1 = arith.constant 0 : index
    %3 = vector.load %arg2[%c0, %c0_1] : memref<16x256xf32, #tpu.memory_space<vmem>>, vector<16x256xf32>
    %c0_2 = arith.constant 0 : index
    %c0_3 = arith.constant 0 : index
    %4 = vector.load %arg3[%c0_2, %c0_3] : memref<16x256xf32, #tpu.memory_space<vmem>>, vector<16x256xf32>
    %c0_4 = arith.constant 0 : index
    %c0_5 = arith.constant 0 : index
    %5 = vector.load %arg4[%c0_4, %c0_5] : memref<16x256xf32, #tpu.memory_space<vmem>>, vector<16x256xf32>
    %c0_6 = arith.constant 0 : index
    %c0_7 = arith.constant 0 : index
    %6 = vector.load %arg5[%c0_6, %c0_7] : memref<16x256xf32, #tpu.memory_space<vmem>>, vector<16x256xf32>
    %c0_8 = arith.constant 0 : index
    %c0_9 = arith.constant 0 : index
    %7 = vector.load %arg6[%c0_8, %c0_9] : memref<16x1xf32, #tpu.memory_space<vmem>>, vector<16x1xf32>
    %8 = arith.mulf %4, %3 : vector<16x256xf32>
    %cst = arith.constant dense<0.000000e+00> : vector<16xf32>
    %9 = vector.multi_reduction <add>, %8, %cst [1] : vector<16x256xf32> to vector<16xf32>
    %10 = vector.shape_cast %9 : vector<16xf32> to vector<16x1xf32>
    %11 = arith.addf %7, %10 : vector<16x1xf32>
    %c0_10 = arith.constant 0 : index
    %c0_11 = arith.constant 0 : index
    %12 = vector.load %arg6[%c0_10, %c0_11] : memref<16x1xf32, #tpu.memory_space<vmem>>, vector<16x1xf32>
    tpu.vector_store %arg6[%c0_10, %c0_11], %11 {strides = array<i32>} : memref<16x1xf32, #tpu.memory_space<vmem>>, vector<16x1xf32>,
    %c0_12 = arith.constant 0 : index
    %c0_13 = arith.constant 0 : index
    %13 = vector.load %arg7[%c0_12, %c0_13] : memref<16x1xf32, #tpu.memory_space<vmem>>, vector<16x1xf32>
    %14 = arith.mulf %3, %3 : vector<16x256xf32>
    %cst_14 = arith.constant dense<0.000000e+00> : vector<16xf32>
    %15 = vector.multi_reduction <add>, %14, %cst_14 [1] : vector<16x256xf32> to vector<16xf32>
    %16 = vector.shape_cast %15 : vector<16xf32> to vector<16x1xf32>
    %17 = arith.addf %13, %16 : vector<16x1xf32>
    %c0_15 = arith.constant 0 : index
    %c0_16 = arith.constant 0 : index
    %18 = vector.load %arg7[%c0_15, %c0_16] : memref<16x1xf32, #tpu.memory_space<vmem>>, vector<16x1xf32>
    tpu.vector_store %arg7[%c0_15, %c0_16], %17 {strides = array<i32>} : memref<16x1xf32, #tpu.memory_space<vmem>>, vector<16x1xf32>,
    %c0_17 = arith.constant 0 : index
    %c0_18 = arith.constant 0 : index
    %19 = vector.load %arg8[%c0_17, %c0_18] : memref<16x1xf32, #tpu.memory_space<vmem>>, vector<16x1xf32>
    %20 = arith.mulf %4, %4 : vector<16x256xf32>
    %cst_19 = arith.constant dense<0.000000e+00> : vector<16xf32>
    %21 = vector.multi_reduction <add>, %20, %cst_19 [1] : vector<16x256xf32> to vector<16xf32>
    %22 = vector.shape_cast %21 : vector<16xf32> to vector<16x1xf32>
    %23 = arith.addf %19, %22 : vector<16x1xf32>
    %c0_20 = arith.constant 0 : index
    %c0_21 = arith.constant 0 : index
    %24 = vector.load %arg8[%c0_20, %c0_21] : memref<16x1xf32, #tpu.memory_space<vmem>>, vector<16x1xf32>
    tpu.vector_store %arg8[%c0_20, %c0_21], %23 {strides = array<i32>} : memref<16x1xf32, #tpu.memory_space<vmem>>, vector<16x1xf32>,
    %c0_22 = arith.constant 0 : index
    %c0_23 = arith.constant 0 : index
    %25 = vector.load %arg9[%c0_22, %c0_23] : memref<16x1xf32, #tpu.memory_space<vmem>>, vector<16x1xf32>
    %26 = arith.mulf %6, %5 : vector<16x256xf32>
    %cst_24 = arith.constant dense<0.000000e+00> : vector<16xf32>
    %27 = vector.multi_reduction <add>, %26, %cst_24 [1] : vector<16x256xf32> to vector<16xf32>
    %28 = vector.shape_cast %27 : vector<16xf32> to vector<16x1xf32>
    %29 = arith.addf %25, %28 : vector<16x1xf32>
    %c0_25 = arith.constant 0 : index
    %c0_26 = arith.constant 0 : index
    %30 = vector.load %arg9[%c0_25, %c0_26] : memref<16x1xf32, #tpu.memory_space<vmem>>, vector<16x1xf32>
    tpu.vector_store %arg9[%c0_25, %c0_26], %29 {strides = array<i32>} : memref<16x1xf32, #tpu.memory_space<vmem>>, vector<16x1xf32>,
    %c0_27 = arith.constant 0 : index
    %c0_28 = arith.constant 0 : index
    %31 = vector.load %arg10[%c0_27, %c0_28] : memref<16x1xf32, #tpu.memory_space<vmem>>, vector<16x1xf32>
    %32 = arith.mulf %5, %5 : vector<16x256xf32>
    %cst_29 = arith.constant dense<0.000000e+00> : vector<16xf32>
    %33 = vector.multi_reduction <add>, %32, %cst_29 [1] : vector<16x256xf32> to vector<16xf32>
    %34 = vector.shape_cast %33 : vector<16xf32> to vector<16x1xf32>
    %35 = arith.addf %31, %34 : vector<16x1xf32>
    %c0_30 = arith.constant 0 : index
    %c0_31 = arith.constant 0 : index
    %36 = vector.load %arg10[%c0_30, %c0_31] : memref<16x1xf32, #tpu.memory_space<vmem>>, vector<16x1xf32>
    tpu.vector_store %arg10[%c0_30, %c0_31], %35 {strides = array<i32>} : memref<16x1xf32, #tpu.memory_space<vmem>>, vector<16x1xf32>,
    %c0_32 = arith.constant 0 : index
    %c0_33 = arith.constant 0 : index
    %37 = vector.load %arg11[%c0_32, %c0_33] : memref<16x1xf32, #tpu.memory_space<vmem>>, vector<16x1xf32>
    %38 = arith.mulf %6, %6 : vector<16x256xf32>
    %cst_34 = arith.constant dense<0.000000e+00> : vector<16xf32>
    %39 = vector.multi_reduction <add>, %38, %cst_34 [1] : vector<16x256xf32> to vector<16xf32>
    %40 = vector.shape_cast %39 : vector<16xf32> to vector<16x1xf32>
    %41 = arith.addf %37, %40 : vector<16x1xf32>
    %c0_35 = arith.constant 0 : index
    %c0_36 = arith.constant 0 : index
    %42 = vector.load %arg11[%c0_35, %c0_36] : memref<16x1xf32, #tpu.memory_space<vmem>>, vector<16x1xf32>
    tpu.vector_store %arg11[%c0_35, %c0_36], %41 {strides = array<i32>} : memref<16x1xf32, #tpu.memory_space<vmem>>, vector<16x1xf32>,
    return
  }
  func.func @transform_0(%arg0: i32, %arg1: i32) -> (i32, i32) {
    %c0_i32 = arith.constant 0 : i32
    return %arg0, %arg1 : i32, i32
  }
  func.func @transform_1(%arg0: i32, %arg1: i32) -> (i32, i32) {
    %c0_i32 = arith.constant 0 : i32
    return %arg0, %arg1 : i32, i32
  }
  func.func @transform_2(%arg0: i32, %arg1: i32) -> (i32, i32) {
    %c0_i32 = arith.constant 0 : i32
    return %arg0, %arg1 : i32, i32
  }
  func.func @transform_3(%arg0: i32, %arg1: i32) -> (i32, i32) {
    %c0_i32 = arith.constant 0 : i32
    return %arg0, %arg1 : i32, i32
  }
  func.func @transform_4(%arg0: i32, %arg1: i32) -> (i32, i32) {
    %c0_i32 = arith.constant 0 : i32
    %c0_i32_0 = arith.constant 0 : i32
    return %arg0, %c0_i32 : i32, i32
  }
  func.func @transform_5(%arg0: i32, %arg1: i32) -> (i32, i32) {
    %c0_i32 = arith.constant 0 : i32
    %c0_i32_0 = arith.constant 0 : i32
    return %arg0, %c0_i32 : i32, i32
  }
  func.func @transform_6(%arg0: i32, %arg1: i32) -> (i32, i32) {
    %c0_i32 = arith.constant 0 : i32
    %c0_i32_0 = arith.constant 0 : i32
    return %arg0, %c0_i32 : i32, i32
  }
  func.func @transform_7(%arg0: i32, %arg1: i32) -> (i32, i32) {
    %c0_i32 = arith.constant 0 : i32
    %c0_i32_0 = arith.constant 0 : i32
    return %arg0, %c0_i32 : i32, i32
  }
  func.func @transform_8(%arg0: i32, %arg1: i32) -> (i32, i32) {
    %c0_i32 = arith.constant 0 : i32
    %c0_i32_0 = arith.constant 0 : i32
    return %arg0, %c0_i32 : i32, i32
  }
  func.func @transform_9(%arg0: i32, %arg1: i32) -> (i32, i32) {
    %c0_i32 = arith.constant 0 : i32
    %c0_i32_0 = arith.constant 0 : i32
    return %arg0, %c0_i32 : i32, i32
  }
}

</mosaic_0001>

<bundles_post_ra>
// kernel: eff_hand_ego_net_loss.1
= control target key start
LH: loop header
LB: loop body
LE: loop exit
PB: predicated region body
PF: predicated region fallthrough
CT: control target
= control target key end

     0   :  { %s1116_s30 = smov 0   ;;  %s1118_s10 = smov 0   ;;  %s1277_s0 = inlined_call_operand.vmem [shape: f32[32,256], index: 0, kind: input, shape index: {}]   ;;  %s1278_s1 = inlined_call_operand.vmem [shape: f32[32,256], index: 1, kind: input, shape index: {}]   ;;  %s1279_s2 = inlined_call_operand.vmem [shape: f32[32,256], index: 2, kind: input, shape index: {}]   ;;  %s1280_s3 = inlined_call_operand.vmem [shape: f32[32,256], index: 3, kind: input, shape index: {}]   ;;  %s1281_s4 = inlined_call_operand.vmem [shape: f32[32,1], index: 4, kind: output, shape index: {0}]   ;;  %s1282_s5 = inlined_call_operand.vmem [shape: f32[32,1], index: 5, kind: output, shape index: {1}]   ;;  %s1283_s6 = inlined_call_operand.vmem [shape: f32[32,1], index: 6, kind: output, shape index: {2}]   ;;  %s1284_s7 = inlined_call_operand.vmem [shape: f32[32,1], index: 7, kind: output, shape index: {3}]   ;;  %s1285_s8 = inlined_call_operand.vmem [shape: f32[32,1], index: 8, kind: output, shape index: {4}]   ;;  %s1286_s9 = inlined_call_operand.vmem [shape: f32[32,1], index: 9, kind: output, shape index: {5}]  }
   0x1   :  { %s1120_s11 = smov 0  }
   0x2 LB: > { %s32_s12 = sadd.s32 1, %s1059_s10  ;;  %p985_p0 = scmp.ge.s32.totalorder %s1063_s11, 1  ;;  %s1063_s11 = sphi %s1120_s11, %s20_s11   ;;  %s1059_s10 = sphi %s1118_s10, %s1288_s10   ;;  %s1055_s30 = sphi %s1116_s30, %s1287_s30  }
   0x3   : > { %p34_p1 = scmp.ge.s32.totalorder %s32_s12, 2  ;;  %p376_p2 = scmp.lt.s32.totalorder %s1063_s11, 3 }
   0x5   : > { %s1290_s12 = smov (%p34_p1, %s32_s12), 0  ;;  %p377_p3 = pnand %p985_p0, %p376_p2 }
   0x6   : > { %s986_s13 = sshll.u32 (!%p377_p3), %s1055_s30, 1  ;;  %vm560_vm0 = vcmask (!%p377_p3), 7168   ;;  %v1065_v14 = vmov (!%p377_p3), 0.0  }
   0x7   : > { %380 = sbr.rel (%p377_p3) target bundleno = 188 (0xbc), region = 36  ;;  %p474_p4 = scmp.lt.s32.totalorder (!%p377_p3), %s986_s13, 3 }
   0xe   : > { %s1292_s13 = smov (!%p474_p4, %s986_s13), 3 }
   0xf   : > { %s1012_s14 = sshll.u32 %s1292_s13, 4  ;;  %s1134_s15 = sshll.u32 %s1292_s13, 3 }
  0x10   : > { %s1139_s18 = scalar_lea.vmem %s1278_s1, %s1012_s14  ;;  %s1144_s21 = scalar_lea.vmem %s1277_s0, %s1012_s14 }
  0x11   : > { %v577_v0 = vld [vmem:[%s1139_s18] sm:$0xff]  ;;  %v578_v1 = vld [vmem:[%s1139_s18 + $0x8] sm:$0xff]  ;;  %s1152_s24 = scalar_lea.vmem %s1279_s2, %s1012_s14  ;;  %s1157_s27 = scalar_lea.vmem %s1280_s3, %s1012_s14  ;;  %v575_v25 = vld [vmem:[%s1144_s21 + $0x10] sm:$0xff] }
  0x12   : > { %v573_v2 = vld [vmem:[%s1144_s21] sm:$0xff]  ;;  %v624_v3 = vmul.f32 %v577_v0, %v577_v0  ;;  %v625_v4 = vmul.f32 %v578_v1, %v578_v1  ;;  %v574_v5 = vld [vmem:[%s1144_s21 + $0x8] sm:$0xff]  ;;  %s1166_s30 = scalar_lea.vmem %s1283_s6, %s1134_s15  ;;  %v576_v26 = vld [vmem:[%s1144_s21 + $0x18] sm:$0xff]  ;;  %v610_v30 = vmul.f32 %v575_v25, %v575_v25  ;;  %s1186_s16 = scalar_lea.vmem %s1281_s4, %s1134_s15 }
  0x13   : > { %v591_v6 = vmul.f32 %v577_v0, %v573_v2  ;;  %v581_v7 = vld [vmem:[%s1152_s24] sm:$0xff]  ;;  %v582_v8 = vld [vmem:[%s1152_s24 + $0x8] sm:$0xff]  ;;  %v592_v9 = vmul.f32 %v578_v1, %v574_v5  ;;  %v608_v12 = vmul.f32 %v573_v2, %v573_v2  ;;  %v609_v13 = vmul.f32 %v574_v5, %v574_v5  ;;  %565 = vst.msk [vmem:[%s1166_s30] sm:$0xff] %vm560_vm0, %v1065_v14  ;;  %v579_v27 = vld [vmem:[%s1139_s18 + $0x10] sm:$0xff]  ;;  %s1196_s19 = scalar_lea.vmem %s1284_s7, %s1134_s15  ;;  %s1202_s22 = scalar_lea.vmem %s1282_s5, %s1134_s15 }
  0x14   : > { %v585_v10 = vld [vmem:[%s1157_s27] sm:$0xff]  ;;  %v586_v11 = vld [vmem:[%s1157_s27 + $0x8] sm:$0xff]  ;;  %v628_v15 = vadd.f32 %v625_v4, %v624_v3  ;;  %566 = vst.msk [vmem:[%s1166_s30 + $0x8] sm:$0xff] %vm560_vm0, %v1065_v14  ;;  %v656_v23 = vmul.f32 %v581_v7, %v581_v7  ;;  %v657_v24 = vmul.f32 %v582_v8, %v582_v8  ;;  %v580_v28 = vld [vmem:[%s1139_s18 + $0x18] sm:$0xff]  ;;  %v611_v31 = vmul.f32 %v576_v26, %v576_v26  ;;  %s1216_s25 = scalar_lea.vmem %s1286_s9, %s1134_s15  ;;  %s1222_s28 = scalar_lea.vmem %s1285_s8, %s1134_s15 }
  0x15   : > { %v640_v16 = vmul.f32 %v585_v10, %v581_v7  ;;  %v641_v17 = vmul.f32 %v586_v11, %v582_v8  ;;  %v595_v18 = vadd.f32 %v592_v9, %v591_v6  ;;  %v672_v20 = vmul.f32 %v585_v10, %v585_v10  ;;  %v583_v32 = vld [vmem:[%s1152_s24 + $0x10] sm:$0xff]  ;;  %v584_v36 = vld [vmem:[%s1152_s24 + $0x18] sm:$0xff]  ;;  %561 = vst.msk [vmem:[%s1186_s16] sm:$0xff] %vm560_vm0, %v1065_v14 }
  0x16   : > { %629 = vadd.xlane.f32.xlu1 %v628_v15  ;;  %v673_v21 = vmul.f32 %v586_v11, %v586_v11  ;;  %v612_v22 = vadd.f32 %v609_v13, %v608_v12  ;;  %v660_v33 = vadd.f32 %v657_v24, %v656_v23  ;;  %v593_v34 = vmul.f32 %v579_v27, %v575_v25  ;;  %v587_v37 = vld [vmem:[%s1157_s27 + $0x10] sm:$0xff]  ;;  %v588_v38 = vld [vmem:[%s1157_s27 + $0x18] sm:$0xff] }
  0x17   : > { %v644_v19 = vadd.f32 %v641_v17, %v640_v16  ;;  %596 = vadd.xlane.f32.xlu0 %v595_v18  ;;  %v594_v35 = vmul.f32 %v580_v28, %v576_v26  ;;  %562 = vst.msk [vmem:[%s1186_s16 + $0x8] sm:$0xff] %vm560_vm0, %v1065_v14  ;;  %v615_v39 = vadd.f32 %v611_v31, %v610_v30  ;;  %567 = vst.msk [vmem:[%s1196_s19] sm:$0xff] %vm560_vm0, %v1065_v14 }
  0x18   : > { %v676_v29 = vadd.f32 %v673_v21, %v672_v20  ;;  %v642_v40 = vmul.f32 %v587_v37, %v583_v32  ;;  %v643_v41 = vmul.f32 %v588_v38, %v584_v36  ;;  %v626_v43 = vmul.f32 %v579_v27, %v579_v27  ;;  %563 = vst.msk [vmem:[%s1202_s22] sm:$0xff] %vm560_vm0, %v1065_v14 }
  0x19   : > { %v598_v42 = vadd.f32 %v594_v35, %v593_v34  ;;  %v627_v44 = vmul.f32 %v580_v28, %v580_v28  ;;  %568 = vst.msk [vmem:[%s1196_s19 + $0x8] sm:$0xff] %vm560_vm0, %v1065_v14  ;;  %564 = vst.msk [vmem:[%s1202_s22 + $0x8] sm:$0xff] %vm560_vm0, %v1065_v14  ;;  %v674_v46 = vmul.f32 %v587_v37, %v587_v37 }
  0x1a   : > { %645 = vadd.xlane.f32.xlu1 %v644_v19  ;;  %v647_v45 = vadd.f32 %v643_v41, %v642_v40  ;;  %v675_v47 = vmul.f32 %v588_v38, %v588_v38  ;;  %v658_v49 = vmul.f32 %v583_v32, %v583_v32  ;;  %v659_v50 = vmul.f32 %v584_v36, %v584_v36  ;;  %v622_v53 = vld [vmem:[%s1166_s30] sm:$0xff] }
  0x1b   : > { %613 = vadd.xlane.f32.xlu0 %v612_v22  ;;  %v631_v48 = vadd.f32 %v627_v44, %v626_v43  ;;  %571 = vst.msk [vmem:[%s1216_s25] sm:$0xff] %vm560_vm0, %v1065_v14  ;;  %569 = vst.msk [vmem:[%s1222_s28] sm:$0xff] %vm560_vm0, %v1065_v14  ;;  %v623_v56 = vld [vmem:[%s1166_s30 + $0x8] sm:$0xff] }
  0x1c   : > { %572 = vst.msk [vmem:[%s1216_s25 + $0x8] sm:$0xff] %vm560_vm0, %v1065_v14  ;;  %570 = vst.msk [vmem:[%s1222_s28 + $0x8] sm:$0xff] %vm560_vm0, %v1065_v14  ;;  %v679_v51 = vadd.f32 %v675_v47, %v674_v46  ;;  %v663_v52 = vadd.f32 %v659_v50, %v658_v49  ;;  %v589_v54 = vld [vmem:[%s1186_s16] sm:$0xff] }
  0x1e   : > { %677 = vadd.xlane.f32.xlu1 %v676_v29  ;;  %v590_v59 = vld [vmem:[%s1186_s16 + $0x8] sm:$0xff]  ;;  %v638_v61 = vld [vmem:[%s1196_s19] sm:$0xff] }
  0x1f   : > { %661 = vadd.xlane.f32.xlu0 %v660_v33  ;;  %v606_v62 = vld [vmem:[%s1202_s22] sm:$0xff] }
  0x20   : > { %v639_v0 = vld [vmem:[%s1196_s19 + $0x8] sm:$0xff] }
  0x21   : > { %v607_v3 = vld [vmem:[%s1202_s22 + $0x8] sm:$0xff] }
  0x22   : > { %616 = vadd.xlane.f32.xlu1 %v615_v39  ;;  %v670_v5 = vld [vmem:[%s1216_s25] sm:$0xff] }
  0x23   : > { %599 = vadd.xlane.f32.xlu0 %v598_v42  ;;  %v654_v6 = vld [vmem:[%s1222_s28] sm:$0xff]  ;;  %v671_v8 = vld [vmem:[%s1216_s25 + $0x8] sm:$0xff] }
  0x24   : > { %v655_v11 = vld [vmem:[%s1222_s28 + $0x8] sm:$0xff] }
  0x26   : > { %648 = vadd.xlane.f32.xlu1 %v647_v45 }
  0x27   : > { %632 = vadd.xlane.f32.xlu0 %v631_v48 }
  0x2a   : > { %680 = vadd.xlane.f32.xlu1 %v679_v51 }
  0x2b   : > { %664 = vadd.xlane.f32.xlu0 %v663_v52 }
  0xa3   : > { %v630_v55 = vpop.xlane.xlu1 %629 }
  0xa4   : > { %v634_v57 = vadd.f32 %v630_v55, %v622_v53  ;;  %v597_v58 = vpop.xlane.xlu0 %596 }
  0xa5   : > { %v601_v60 = vadd.f32 %v597_v58, %v589_v54 }
  0xa6   : > { %636 = vst.msk [vmem:[%s1166_s30] sm:$0xff] %vm560_vm0, %v634_v57 }
  0xa7   : > { %v646_v63 = vpop.xlane.xlu1 %645  ;;  %604 = vst.msk [vmem:[%s1186_s16] sm:$0xff] %vm560_vm0, %v601_v60 }
  0xa8   : > { %v650_v1 = vadd.f32 %v646_v63, %v638_v61  ;;  %v614_v2 = vpop.xlane.xlu0 %613 }
  0xa9   : > { %v618_v4 = vadd.f32 %v614_v2, %v606_v62 }
  0xaa   : > { %652 = vst.msk [vmem:[%s1196_s19] sm:$0xff] %vm560_vm0, %v650_v1 }
  0xab   : > { %v678_v7 = vpop.xlane.xlu1 %677  ;;  %620 = vst.msk [vmem:[%s1202_s22] sm:$0xff] %vm560_vm0, %v618_v4 }
  0xac   : > { %v682_v9 = vadd.f32 %v678_v7, %v670_v5  ;;  %v662_v10 = vpop.xlane.xlu0 %661 }
  0xad   : > { %v666_v12 = vadd.f32 %v662_v10, %v654_v6 }
  0xae   : > { %684 = vst.msk [vmem:[%s1216_s25] sm:$0xff] %vm560_vm0, %v682_v9 }
  0xaf   : > { %v617_v13 = vpop.xlane.xlu1 %616  ;;  %668 = vst.msk [vmem:[%s1222_s28] sm:$0xff] %vm560_vm0, %v666_v12 }
  0xb0   : > { %v619_v14 = vadd.f32 %v617_v13, %v607_v3  ;;  %v600_v15 = vpop.xlane.xlu0 %599 }
  0xb1   : > { %v602_v16 = vadd.f32 %v600_v15, %v590_v59 }
  0xb2   : > { %621 = vst.msk [vmem:[%s1202_s22 + $0x8] sm:$0xff] %vm560_vm0, %v619_v14 }
  0xb3   : > { %605 = vst.msk [vmem:[%s1186_s16 + $0x8] sm:$0xff] %vm560_vm0, %v602_v16  ;;  %v649_v17 = vpop.xlane.xlu1 %648 }
  0xb4   : > { %v651_v18 = vadd.f32 %v649_v17, %v639_v0  ;;  %v633_v19 = vpop.xlane.xlu0 %632 }
  0xb5   : > { %v635_v20 = vadd.f32 %v633_v19, %v623_v56 }
  0xb6   : > { %653 = vst.msk [vmem:[%s1196_s19 + $0x8] sm:$0xff] %vm560_vm0, %v651_v18 }
  0xb7   : > { %637 = vst.msk [vmem:[%s1166_s30 + $0x8] sm:$0xff] %vm560_vm0, %v635_v20  ;;  %v681_v21 = vpop.xlane.xlu1 %680 }
  0xb8   : > { %v683_v22 = vadd.f32 %v681_v21, %v671_v8  ;;  %v665_v23 = vpop.xlane.xlu0 %664 }
  0xb9   : > { %v667_v24 = vadd.f32 %v665_v23, %v655_v11 }
  0xba   : > { %685 = vst.msk [vmem:[%s1216_s25 + $0x8] sm:$0xff] %vm560_vm0, %v683_v22 }
  0xbb   : > { %669 = vst.msk [vmem:[%s1222_s28 + $0x8] sm:$0xff] %vm560_vm0, %v667_v24 }
  0xbc PF: > { %s20_s11 = sadd.s32 1, %s1063_s11   ;;  %s1287_s30 = smov %s1059_s10 }
  0xbd   : > { %p17_p5 = scmp.ge.s32.totalorder %s20_s11, 4   ;;  %s1288_s10 = smov %s1290_s12 }
  0xbf   :  { %19 = sbr.rel (!%p17_p5) target bundleno = 2 (0x2), region = 139 }

</bundles_post_ra>
